<compile_context>
chip_gen: v7x
topology: tpu7x:2x2x1
jax: 0.10.0
libtpu: 0.0.40
codegen_flags: <defaults>
</compile_context>

<pallas_src>
import math

import jax
import jax.numpy as jnp
from jax.experimental import pallas as pl
from jax.experimental.pallas import tpu as pltpu


def _min_sublane(dtype):
    """Minimum legal second-minor block size for a dtype on TPU."""
    itemsize = jnp.dtype(dtype).itemsize
    if itemsize >= 4:
        return 8
    if itemsize == 2:
        return 16
    return 32


def _choose_lane(S):
    """Largest multiple-of-128 lane width that divides S exactly (no padding)."""
    for cand in (2048, 1024, 512, 384, 256, 128):
        if S % cand == 0:
            return cand
    return None


def _choose_tile_rows(rows, lane, row_align):
    """Tile rows: ~512K elements per input per buffer; prefer an exact divisor
    of `rows` (no in-kernel row masking); otherwise an aligned cap (ragged)."""
    target_elems = 512 * 1024
    cap = max(row_align, target_elems // lane)
    if rows <= cap:
        return rows
    t = (cap // row_align) * row_align
    while t >= row_align:
        if rows % t == 0:
            return t
        t -= row_align
    return (cap // row_align) * row_align


def _make_kernel(*, has_mask, tr, rows, nt_per, ragged, need_gate):
    """Build the streaming sufficient-statistics kernel (static config baked in)."""

    def accumulate(p_ref, g_ref, m_ref, out_ref):
        p = p_ref[...].astype(jnp.float32)
        g = g_ref[...].astype(jnp.float32)
        if has_mask:
            m = m_ref[...].astype(jnp.float32)
        else:
            m = (g > 0.0).astype(jnp.float32)
        if ragged:
            # Statically-known ragged last tile: zero rows past the true extent
            # (the partial DMA leaves unspecified data in the overhang rows).
            gt = pl.program_id(1) * nt_per + pl.program_id(2)
            valid = rows - gt * tr
            keep = jax.lax.broadcasted_iota(jnp.int32, p.shape, 0) < valid
            zero = jnp.zeros_like(p)
            p = jnp.where(keep, p, zero)
            g = jnp.where(keep, g, zero)
            m = jnp.where(keep, m, zero)

        mp = m * p
        # Per-lane partial sums (sublane reduction only); cross-lane reduction
        # and the scale/shift solve happen once, in the tiny XLA epilogue.
        out_ref[0:1, :] += jnp.sum(mp * p, axis=0, keepdims=True)  # a00
        out_ref[1:2, :] += jnp.sum(mp, axis=0, keepdims=True)      # a01
        out_ref[3:4, :] += jnp.sum(mp * g, axis=0, keepdims=True)  # b0
        mg = m * g
        out_ref[4:5, :] += jnp.sum(mg, axis=0, keepdims=True)      # b1
        out_ref[5:6, :] += jnp.sum(mg * g, axis=0, keepdims=True)  # c
        out_ref[2:3, :] += jnp.sum(m, axis=0, keepdims=True)       # a11

    def kernel(*refs):
        if has_mask:
            p_ref, g_ref, m_ref, out_ref = refs
        else:
            p_ref, g_ref, out_ref = refs
            m_ref = None
        t = pl.program_id(2)

        @pl.when(t == 0)
        def _():
            out_ref[...] = jnp.zeros_like(out_ref)

        if need_gate:
            s = pl.program_id(1)

            @pl.when((s * nt_per + t) * tr < rows)
            def _():
                accumulate(p_ref, g_ref, m_ref, out_ref)
        else:
            accumulate(p_ref, g_ref, m_ref, out_ref)

    return kernel


def _finish_from_sums(stats):
    """Tiny O(B) epilogue in plain XLA: scale/shift solve + batch reduction."""
    # Use f64 when x64 is enabled (mitigates cancellation in the expanded
    # quadratic); canonicalize_dtype silently keeps f32 otherwise.
    wd = jax.dtypes.canonicalize_dtype(jnp.float64)
    st = stats.astype(wd)
    a00, a01, a11, b0, b1, c = (st[:, i] for i in range(6))
    det = a00 * a11 - a01 * a01
    valid = det != 0.0
    safe_det = jnp.where(valid, det, 1.0)
    scale = jnp.where(valid, (a11 * b0 - a01 * b1) / safe_det, 0.0)
    shift = jnp.where(valid, (-a01 * b0 + a00 * b1) / safe_det, 0.0)
    # Σ m·(scale·p + shift − g)² via the expanded quadratic form.
    image_loss = (scale * scale * a00 + 2.0 * scale * shift * a01
                  + shift * shift * a11
                  - 2.0 * scale * b0 - 2.0 * shift * b1 + c)
    divisor = 2.0 * jnp.sum(a11)
    loss = jnp.where(divisor == 0.0, 0.0,
                     jnp.sum(image_loss) / jnp.where(divisor == 0.0, 1.0, divisor))
    return loss.astype(jnp.float32)


def midas_loss(pdepth, gdepth, mask=None, *, tile_rows=None, lane=None):
    """Pallas-TPU MidasLoss.  pdepth/gdepth: (B, H, W) (or (B, ...spatial))."""
    assert pdepth.shape == gdepth.shape
    B = pdepth.shape[0]
    S = int(math.prod(pdepth.shape[1:]))

    if mask is not None:
        assert mask.shape == pdepth.shape
        if mask.dtype == jnp.bool_:
            # Stream at 1 byte/elem; widened to f32 inside the kernel.
            mask = mask.astype(jnp.int8)

    # ---- geometry: lane-dense (B, rows, LANE) view, no padding if possible --
    LANE = int(lane) if lane is not None else _choose_lane(S)
    pad = 0
    if LANE is None or S % LANE != 0:
        # TODO(synk): rare ragged case (no multiple-of-128 divisor of S): fall
        # back to a minimal zero-pad, which costs one extra HBM copy per input.
        LANE = 128 if LANE is None else LANE
        pad = (-S) % LANE
    rows = (S + pad) // LANE

    row_aligns = [_min_sublane(pdepth.dtype), _min_sublane(gdepth.dtype)]
    if mask is not None:
        row_aligns.append(_min_sublane(mask.dtype))
    row_align = max(row_aligns)

    if tile_rows is None:
        tr = _choose_tile_rows(rows, LANE, row_align)
    else:
        tr = min(int(tile_rows), rows)
        if tr != rows and tr % row_align != 0:
            tr = min(rows, max(row_align, (tr // row_align) * row_align))
    tr = max(tr, 1)

    nt_total = -(-rows // tr)
    ragged = (rows % tr) != 0
    # Megacore: for B == 1 split the tile range across two parallel chunks so
    # both v7x TensorCores get work; partials are summed in the XLA epilogue.
    NS = 2 if (B == 1 and nt_total >= 2) else 1
    nt_per = -(-nt_total // NS)
    need_gate = NS * nt_per > nt_total

    def to_slab(x):
        x2 = x.reshape(B, S)
        if pad:
            x2 = jnp.pad(x2, ((0, 0), (0, pad)))
        return x2.reshape(B, rows, LANE)   # free reshape when pad == 0

    p_slab = to_slab(pdepth)
    g_slab = to_slab(gdepth)

    def data_spec():
        return pl.BlockSpec(
            (None, tr, LANE),
            lambda b, s, t: (b, jnp.minimum(s * nt_per + t, nt_total - 1), 0))

    if mask is None:
        operands = (p_slab, g_slab)
        in_specs = [data_spec(), data_spec()]
    else:
        m_slab = to_slab(mask)
        operands = (p_slab, g_slab, m_slab)
        in_specs = [data_spec(), data_spec(), data_spec()]

    out_spec = pl.BlockSpec((None, None, 8, LANE), lambda b, s, t: (b, s, 0, 0))
    out_shape = jax.ShapeDtypeStruct((B, NS, 8, LANE), jnp.float32)

    kernel = _make_kernel(has_mask=mask is not None, tr=tr, rows=rows,
                          nt_per=nt_per, ragged=ragged, need_gate=need_gate)

    bytes_in = sum(int(x.size) * jnp.dtype(x.dtype).itemsize for x in operands)
    cost = pl.CostEstimate(flops=13 * B * rows * LANE, transcendentals=0,
                           bytes_accessed=bytes_in + B * NS * 8 * LANE * 4)

    sums = pl.pallas_call(
        kernel,
        out_shape=out_shape,
        grid=(B, NS, nt_per),
        in_specs=in_specs,
        out_specs=out_spec,
        compiler_params=pltpu.CompilerParams(
            dimension_semantics=("parallel", "parallel", "arbitrary"),
            vmem_limit_bytes=32 * 1024 * 1024),
        cost_estimate=cost,
    )(*operands)

    stats = jnp.sum(sums, axis=(1, 3))[:, :6]   # (B, 6) per-image statistics
    return _finish_from_sums(stats)


def _reference_midas_loss(pdepth, gdepth, mask=None):
    """Direct JAX translation of the PyTorch MidasLoss (for validation)."""
    p = pdepth.astype(jnp.float32)
    g = gdepth.astype(jnp.float32)
    m = (g > 0).astype(jnp.float32) if mask is None else mask.astype(jnp.float32)
    axes = tuple(range(1, p.ndim))
    a00 = jnp.sum(m * p * p, axes)
    a01 = jnp.sum(m * p, axes)
    a11 = jnp.sum(m, axes)
    b0 = jnp.sum(m * p * g, axes)
    b1 = jnp.sum(m * g, axes)
    det = a00 * a11 - a01 * a01
    valid = det != 0.0
    sd = jnp.where(valid, det, 1.0)
    x0 = jnp.where(valid, (a11 * b0 - a01 * b1) / sd, 0.0)
    x1 = jnp.where(valid, (-a01 * b0 + a00 * b1) / sd, 0.0)
    bshape = (-1,) + (1,) * (p.ndim - 1)
    pred_ssi = x0.reshape(bshape) * p + x1.reshape(bshape)
    res = pred_ssi - g
    image_loss = jnp.sum(m * res * res, axes)
    divisor = jnp.sum(2.0 * a11)
    return jnp.where(divisor == 0.0, 0.0,
                     jnp.sum(image_loss) / jnp.where(divisor == 0.0, 1.0, divisor))


if __name__ == "__main__":
    key = jax.random.PRNGKey(0)
    k1, k2, k3, k4, k5, k6 = jax.random.split(key, 6)

    # Case 1: tiny image, single tile (LANE=256 divides 16*16 exactly, no pad).
    p1 = jax.random.normal(k1, (2, 16, 16), jnp.float32)
    g1 = jax.random.normal(k2, (2, 16, 16), jnp.float32)
    out1 = midas_loss(p1, g1)
    ref1 = _reference_midas_loss(p1, g1)

    # Case 2: multi-tile accumulation with a ragged last tile
    # (96*96 / 512 = 18 rows, tile_rows=8 -> 3 tiles, last tile 2 valid rows).
    p2 = jax.random.normal(k3, (2, 96, 96), jnp.float32)
    g2 = jax.random.normal(k4, (2, 96, 96), jnp.float32)
    out2 = midas_loss(p2, g2, tile_rows=8, lane=512)
    ref2 = _reference_midas_loss(p2, g2)

    # Case 3: explicit boolean mask streamed as int8 (min sublane 32).
    p3 = jax.random.normal(k5, (2, 256, 256), jnp.float32)
    g3 = jax.random.normal(k6, (2, 256, 256), jnp.float32)
    m3 = g3 > 0.25
    out3 = midas_loss(p3, g3, m3, tile_rows=32, lane=512)
    ref3 = _reference_midas_loss(p3, g3, m3)

    # Case 4: B == 1 -> tile range split across two parallel chunks (megacore).
    p4 = jax.random.normal(k1, (1, 128, 256), jnp.float32)
    g4 = jax.random.normal(k2, (1, 128, 256), jnp.float32)
    out4 = midas_loss(p4, g4, tile_rows=8, lane=512)
    ref4 = _reference_midas_loss(p4, g4)

    # Case 5: bf16 inputs streamed at native width, widened in-kernel.
    p5 = p2.astype(jnp.bfloat16)
    g5 = g2.astype(jnp.bfloat16)
    out5 = midas_loss(p5, g5)
    ref5 = _reference_midas_loss(p5, g5)

    # Case 6: empty mask (gdepth <= 0 everywhere) -> divisor == 0 -> loss 0.
    out6 = midas_loss(p1, jnp.zeros_like(g1))
    ref6 = _reference_midas_loss(p1, jnp.zeros_like(g1))

    for o, r in ((out1, ref1), (out2, ref2), (out3, ref3),
                 (out4, ref4), (out5, ref5), (out6, ref6)):
        jax.block_until_ready(o)
        assert jnp.allclose(o, r, rtol=1e-3, atol=1e-5), (o, r)
    print("KERNEL_OK")
</pallas_src>

<mosaic_0001>
module attributes {stable_mosaic.version = 11 : i64} {
  func.func @kernel(%arg0: i32, %arg1: i32, %arg2: i32, %arg3: memref<1x1x256xf32, #tpu.memory_space<vmem>>, %arg4: memref<1x1x256xf32, #tpu.memory_space<vmem>>, %arg5: memref<1x1x8x256xf32, #tpu.memory_space<vmem>>) attributes {dimension_semantics = [#tpu.dimension_semantics<parallel>, #tpu.dimension_semantics<parallel>, #tpu.dimension_semantics<arbitrary>], iteration_bounds = array<i64: 2, 1, 1>, scalar_prefetch = 0 : i64, scratch_operands = 0 : i64, tpu.core_type = #tpu.core_type<tc>, window_params = [{transform_indices = @transform_0, window_bounds = array<i64: 1, 1, 256>}, {transform_indices = @transform_1, window_bounds = array<i64: 1, 1, 256>}, {transform_indices = @transform_2, window_bounds = array<i64: 1, 1, 8, 256>}]} {
    %c0_i32 = arith.constant 0 : i32
    %0 = arith.cmpi eq, %arg2, %c0_i32 : i32
    %1 = arith.extui %0 : i1 to i32
    %c0_i32_0 = arith.constant 0 : i32
    %2 = arith.cmpi ne, %1, %c0_i32_0 : i32
    scf.if %2 {
      %cst_55 = arith.constant 0.000000e+00 : f32
      %64 = vector.broadcast %cst_55 : f32 to vector<8x256xf32>
      %c0_56 = arith.constant 0 : index
      %c0_57 = arith.constant 0 : index
      %c0_58 = arith.constant 0 : index
      %c0_59 = arith.constant 0 : index
      %65 = vector.load %arg5[%c0_56, %c0_57, %c0_58, %c0_59] : memref<1x1x8x256xf32, #tpu.memory_space<vmem>>, vector<1x1x8x256xf32>
      %66 = vector.shape_cast %65 : vector<1x1x8x256xf32> to vector<8x256xf32>
      %67 = vector.shape_cast %64 : vector<8x256xf32> to vector<1x1x8x256xf32>
      tpu.vector_store %arg5[%c0_56, %c0_57, %c0_58, %c0_59], %67 {strides = array<i32>} : memref<1x1x8x256xf32, #tpu.memory_space<vmem>>, vector<1x1x8x256xf32>,
    } else {
    }
    %c0 = arith.constant 0 : index
    %c0_1 = arith.constant 0 : index
    %c0_2 = arith.constant 0 : index
    %3 = vector.load %arg3[%c0, %c0_1, %c0_2] : memref<1x1x256xf32, #tpu.memory_space<vmem>>, vector<1x1x256xf32>
    %4 = vector.shape_cast %3 : vector<1x1x256xf32> to vector<1x256xf32>
    %c0_3 = arith.constant 0 : index
    %c0_4 = arith.constant 0 : index
    %c0_5 = arith.constant 0 : index
    %5 = vector.load %arg4[%c0_3, %c0_4, %c0_5] : memref<1x1x256xf32, #tpu.memory_space<vmem>>, vector<1x1x256xf32>
    %6 = vector.shape_cast %5 : vector<1x1x256xf32> to vector<1x256xf32>
    %cst = arith.constant 0.000000e+00 : f32
    %7 = vector.broadcast %cst : f32 to vector<1x256xf32>
    %8 = arith.cmpf ogt, %6, %7 : vector<1x256xf32>
    %9 = arith.extui %8 : vector<1x256xi1> to vector<1x256xi32>
    %10 = arith.sitofp %9 : vector<1x256xi32> to vector<1x256xf32>
    %11 = arith.mulf %10, %4 : vector<1x256xf32>
    %c0_6 = arith.constant 0 : index
    %c0_7 = arith.constant 0 : index
    %c0_8 = arith.constant 0 : index
    %c0_9 = arith.constant 0 : index
    %12 = vector.load %arg5[%c0_6, %c0_7, %c0_8, %c0_9] : memref<1x1x8x256xf32, #tpu.memory_space<vmem>>, vector<1x1x1x256xf32>
    %13 = vector.shape_cast %12 : vector<1x1x1x256xf32> to vector<1x256xf32>
    %14 = arith.mulf %11, %4 : vector<1x256xf32>
    %cst_10 = arith.constant dense<0.000000e+00> : vector<256xf32>
    %15 = vector.multi_reduction <add>, %14, %cst_10 [0] : vector<1x256xf32> to vector<256xf32>
    %16 = vector.shape_cast %15 : vector<256xf32> to vector<1x256xf32>
    %17 = arith.addf %13, %16 : vector<1x256xf32>
    %c0_11 = arith.constant 0 : index
    %c0_12 = arith.constant 0 : index
    %c0_13 = arith.constant 0 : index
    %c0_14 = arith.constant 0 : index
    %18 = vector.load %arg5[%c0_11, %c0_12, %c0_13, %c0_14] : memref<1x1x8x256xf32, #tpu.memory_space<vmem>>, vector<1x1x1x256xf32>
    %19 = vector.shape_cast %18 : vector<1x1x1x256xf32> to vector<1x256xf32>
    %20 = vector.shape_cast %17 : vector<1x256xf32> to vector<1x1x1x256xf32>
    tpu.vector_store %arg5[%c0_11, %c0_12, %c0_13, %c0_14], %20 {strides = array<i32>} : memref<1x1x8x256xf32, #tpu.memory_space<vmem>>, vector<1x1x1x256xf32>,
    %c0_15 = arith.constant 0 : index
    %c0_16 = arith.constant 0 : index
    %c1 = arith.constant 1 : index
    %c0_17 = arith.constant 0 : index
    %21 = vector.load %arg5[%c0_15, %c0_16, %c1, %c0_17] : memref<1x1x8x256xf32, #tpu.memory_space<vmem>>, vector<1x1x1x256xf32>
    %22 = vector.shape_cast %21 : vector<1x1x1x256xf32> to vector<1x256xf32>
    %cst_18 = arith.constant dense<0.000000e+00> : vector<256xf32>
    %23 = vector.multi_reduction <add>, %11, %cst_18 [0] : vector<1x256xf32> to vector<256xf32>
    %24 = vector.shape_cast %23 : vector<256xf32> to vector<1x256xf32>
    %25 = arith.addf %22, %24 : vector<1x256xf32>
    %c0_19 = arith.constant 0 : index
    %c0_20 = arith.constant 0 : index
    %c1_21 = arith.constant 1 : index
    %c0_22 = arith.constant 0 : index
    %26 = vector.load %arg5[%c0_19, %c0_20, %c1_21, %c0_22] : memref<1x1x8x256xf32, #tpu.memory_space<vmem>>, vector<1x1x1x256xf32>
    %27 = vector.shape_cast %26 : vector<1x1x1x256xf32> to vector<1x256xf32>
    %28 = vector.shape_cast %25 : vector<1x256xf32> to vector<1x1x1x256xf32>
    tpu.vector_store %arg5[%c0_19, %c0_20, %c1_21, %c0_22], %28 {strides = array<i32>} : memref<1x1x8x256xf32, #tpu.memory_space<vmem>>, vector<1x1x1x256xf32>,
    %c0_23 = arith.constant 0 : index
    %c0_24 = arith.constant 0 : index
    %c3 = arith.constant 3 : index
    %c0_25 = arith.constant 0 : index
    %29 = vector.load %arg5[%c0_23, %c0_24, %c3, %c0_25] : memref<1x1x8x256xf32, #tpu.memory_space<vmem>>, vector<1x1x1x256xf32>
    %30 = vector.shape_cast %29 : vector<1x1x1x256xf32> to vector<1x256xf32>
    %31 = arith.mulf %11, %6 : vector<1x256xf32>
    %cst_26 = arith.constant dense<0.000000e+00> : vector<256xf32>
    %32 = vector.multi_reduction <add>, %31, %cst_26 [0] : vector<1x256xf32> to vector<256xf32>
    %33 = vector.shape_cast %32 : vector<256xf32> to vector<1x256xf32>
    %34 = arith.addf %30, %33 : vector<1x256xf32>
    %c0_27 = arith.constant 0 : index
    %c0_28 = arith.constant 0 : index
    %c3_29 = arith.constant 3 : index
    %c0_30 = arith.constant 0 : index
    %35 = vector.load %arg5[%c0_27, %c0_28, %c3_29, %c0_30] : memref<1x1x8x256xf32, #tpu.memory_space<vmem>>, vector<1x1x1x256xf32>
    %36 = vector.shape_cast %35 : vector<1x1x1x256xf32> to vector<1x256xf32>
    %37 = vector.shape_cast %34 : vector<1x256xf32> to vector<1x1x1x256xf32>
    tpu.vector_store %arg5[%c0_27, %c0_28, %c3_29, %c0_30], %37 {strides = array<i32>} : memref<1x1x8x256xf32, #tpu.memory_space<vmem>>, vector<1x1x1x256xf32>,
    %38 = arith.mulf %10, %6 : vector<1x256xf32>
    %c0_31 = arith.constant 0 : index
    %c0_32 = arith.constant 0 : index
    %c4 = arith.constant 4 : index
    %c0_33 = arith.constant 0 : index
    %39 = vector.load %arg5[%c0_31, %c0_32, %c4, %c0_33] : memref<1x1x8x256xf32, #tpu.memory_space<vmem>>, vector<1x1x1x256xf32>
    %40 = vector.shape_cast %39 : vector<1x1x1x256xf32> to vector<1x256xf32>
    %cst_34 = arith.constant dense<0.000000e+00> : vector<256xf32>
    %41 = vector.multi_reduction <add>, %38, %cst_34 [0] : vector<1x256xf32> to vector<256xf32>
    %42 = vector.shape_cast %41 : vector<256xf32> to vector<1x256xf32>
    %43 = arith.addf %40, %42 : vector<1x256xf32>
    %c0_35 = arith.constant 0 : index
    %c0_36 = arith.constant 0 : index
    %c4_37 = arith.constant 4 : index
    %c0_38 = arith.constant 0 : index
    %44 = vector.load %arg5[%c0_35, %c0_36, %c4_37, %c0_38] : memref<1x1x8x256xf32, #tpu.memory_space<vmem>>, vector<1x1x1x256xf32>
    %45 = vector.shape_cast %44 : vector<1x1x1x256xf32> to vector<1x256xf32>
    %46 = vector.shape_cast %43 : vector<1x256xf32> to vector<1x1x1x256xf32>
    tpu.vector_store %arg5[%c0_35, %c0_36, %c4_37, %c0_38], %46 {strides = array<i32>} : memref<1x1x8x256xf32, #tpu.memory_space<vmem>>, vector<1x1x1x256xf32>,
    %c0_39 = arith.constant 0 : index
    %c0_40 = arith.constant 0 : index
    %c5 = arith.constant 5 : index
    %c0_41 = arith.constant 0 : index
    %47 = vector.load %arg5[%c0_39, %c0_40, %c5, %c0_41] : memref<1x1x8x256xf32, #tpu.memory_space<vmem>>, vector<1x1x1x256xf32>
    %48 = vector.shape_cast %47 : vector<1x1x1x256xf32> to vector<1x256xf32>
    %49 = arith.mulf %38, %6 : vector<1x256xf32>
    %cst_42 = arith.constant dense<0.000000e+00> : vector<256xf32>
    %50 = vector.multi_reduction <add>, %49, %cst_42 [0] : vector<1x256xf32> to vector<256xf32>
    %51 = vector.shape_cast %50 : vector<256xf32> to vector<1x256xf32>
    %52 = arith.addf %48, %51 : vector<1x256xf32>
    %c0_43 = arith.constant 0 : index
    %c0_44 = arith.constant 0 : index
    %c5_45 = arith.constant 5 : index
    %c0_46 = arith.constant 0 : index
    %53 = vector.load %arg5[%c0_43, %c0_44, %c5_45, %c0_46] : memref<1x1x8x256xf32, #tpu.memory_space<vmem>>, vector<1x1x1x256xf32>
    %54 = vector.shape_cast %53 : vector<1x1x1x256xf32> to vector<1x256xf32>
    %55 = vector.shape_cast %52 : vector<1x256xf32> to vector<1x1x1x256xf32>
    tpu.vector_store %arg5[%c0_43, %c0_44, %c5_45, %c0_46], %55 {strides = array<i32>} : memref<1x1x8x256xf32, #tpu.memory_space<vmem>>, vector<1x1x1x256xf32>,
    %c0_47 = arith.constant 0 : index
    %c0_48 = arith.constant 0 : index
    %c2 = arith.constant 2 : index
    %c0_49 = arith.constant 0 : index
    %56 = vector.load %arg5[%c0_47, %c0_48, %c2, %c0_49] : memref<1x1x8x256xf32, #tpu.memory_space<vmem>>, vector<1x1x1x256xf32>
    %57 = vector.shape_cast %56 : vector<1x1x1x256xf32> to vector<1x256xf32>
    %cst_50 = arith.constant dense<0.000000e+00> : vector<256xf32>
    %58 = vector.multi_reduction <add>, %10, %cst_50 [0] : vector<1x256xf32> to vector<256xf32>
    %59 = vector.shape_cast %58 : vector<256xf32> to vector<1x256xf32>
    %60 = arith.addf %57, %59 : vector<1x256xf32>
    %c0_51 = arith.constant 0 : index
    %c0_52 = arith.constant 0 : index
    %c2_53 = arith.constant 2 : index
    %c0_54 = arith.constant 0 : index
    %61 = vector.load %arg5[%c0_51, %c0_52, %c2_53, %c0_54] : memref<1x1x8x256xf32, #tpu.memory_space<vmem>>, vector<1x1x1x256xf32>
    %62 = vector.shape_cast %61 : vector<1x1x1x256xf32> to vector<1x256xf32>
    %63 = vector.shape_cast %60 : vector<1x256xf32> to vector<1x1x1x256xf32>
    tpu.vector_store %arg5[%c0_51, %c0_52, %c2_53, %c0_54], %63 {strides = array<i32>} : memref<1x1x8x256xf32, #tpu.memory_space<vmem>>, vector<1x1x1x256xf32>,
    return
  }
  func.func @transform_0(%arg0: i32, %arg1: i32, %arg2: i32) -> (i32, i32, i32) {
    %c1_i32 = arith.constant 1 : i32
    %0 = arith.muli %arg1, %c1_i32 : i32
    %1 = arith.addi %0, %arg2 : i32
    %c0_i32 = arith.constant 0 : i32
    %2 = arith.minsi %1, %c0_i32 : i32
    %c0_i32_0 = arith.constant 0 : i32
    %c0_i32_1 = arith.constant 0 : i32
    return %arg0, %2, %c0_i32_0 : i32, i32, i32
  }
  func.func @transform_1(%arg0: i32, %arg1: i32, %arg2: i32) -> (i32, i32, i32) {
    %c1_i32 = arith.constant 1 : i32
    %0 = arith.muli %arg1, %c1_i32 : i32
    %1 = arith.addi %0, %arg2 : i32
    %c0_i32 = arith.constant 0 : i32
    %2 = arith.minsi %1, %c0_i32 : i32
    %c0_i32_0 = arith.constant 0 : i32
    %c0_i32_1 = arith.constant 0 : i32
    return %arg0, %2, %c0_i32_0 : i32, i32, i32
  }
  func.func @transform_2(%arg0: i32, %arg1: i32, %arg2: i32) -> (i32, i32, i32, i32) {
    %c0_i32 = arith.constant 0 : i32
    %c0_i32_0 = arith.constant 0 : i32
    %c0_i32_1 = arith.constant 0 : i32
    return %arg0, %arg1, %c0_i32, %c0_i32_0 : i32, i32, i32, i32
  }
}

</mosaic_0001>

<bundles_post_ra>
// kernel: tpu_custom_call.1
= control target key start
LH: loop header
LB: loop body
LE: loop exit
PB: predicated region body
PF: predicated region fallthrough
CT: control target
= control target key end

     0   :  { %7 = vsyncpa [#allocation3], 0  ;;  %s958_s0 = inlined_call_operand.hbm [shape: f32[2,1,256], index: 0, kind: input, shape index: {}]   ;;  %s959_s1 = inlined_call_operand.hbm [shape: f32[2,1,256], index: 1, kind: input, shape index: {}]   ;;  %s960_s2 = inlined_call_operand.hbm [shape: f32[2,1,8,256], index: 2, kind: output, shape index: {}]  }
   0x1   :  { %9 = vsyncpa [#allocation3 + $0x1], 0 }
   0x2   :  { %10 = vsyncpa [#allocation6], 0 }
   0x3   :  { %12 = vsyncpa [#allocation6 + $0x1], 0 }
   0x4   :  { %13 = vsyncpa [#allocation4], 0 }
   0x5   :  { %15 = vsyncpa [#allocation4 + $0x1], 0  ;;  %s704_s9 = smov 0   ;;  %s706_s10 = smov 0  }
   0x6   :  { %s708_s11 = smov 0   ;;  %s710_s12 = smov 0  }
   0x7   :  { %s712_s13 = smov 0   ;;  %s714_s14 = smov 0  }
   0x8 LB: > { %s436_s15 = sadd.s32 4294967295, %s683_s14   ;;  %s437_s16 = sadd.s32 4294967294, %s683_s14   ;;  %s683_s14 = sphi %s714_s14, %s21_s14   ;;  %s679_s13 = sphi %s712_s13, %s982_s13   ;;  %s675_s12 = sphi %s710_s12, %s981_s12   ;;  %s671_s11 = sphi %s708_s11, %s980_s11   ;;  %s667_s10 = sphi %s706_s10, %s979_s10   ;;  %s663_s9 = sphi %s704_s9, %s978_s9  }
   0x9   : > { %s40_s17 = sadd.s32 1, %s679_s13  ;;  %s55_s18 = sadd.s32 1, %s671_s11 }
   0xa   : > { %p42_p0 = scmp.ge.s32.totalorder %s40_s17, 2  ;;  %p62_p1 = scmp.ne.s32.totalorder %s671_s11, %s667_s10 }
   0xb   : > { %p63_p2 = scmp.eq.s32.totalorder %s683_s14, 0  ;;  %p68_p3 = scmp.ne.s32.totalorder %s667_s10, %s663_s9 }
   0xc   : > { %s984_s17 = smov (%p42_p0, %s40_s17), 0  ;;  %p69_p5 = scmp.eq.s32.totalorder %s436_s15, 0 }
   0xd   : > { %p745_p4 = por %p63_p2, %p62_p1  ;;  %s50_s20 = ssub.s32 %s679_s13, %s984_s17 }
   0xe   : > { %p128_p6 = scmp.eq.s32.totalorder %s436_s15, 1  ;;  %p53_p7 = scmp.eq.s32.totalorder %s50_s20, 0 }
   0xf   : > { %p751_p8 = por %p69_p5, %p68_p3  ;;  %p134_p10 = scmp.eq.s32.totalorder %s437_s16, 1 }
  0x10   : > { %p755_p9 = por %p128_p6, %p62_p1  ;;  %p486_p13 = scmp.lt.s32.totalorder %s683_s14, 2 }
  0x11   : > { %s964_s21 = scalar_select %p751_p8, 1, 0 }
  0x12   : > { %s965_s22 = scalar_select %p755_p9, 1, 0 }
  0x13   : > { %s760_s23 = scalar_select %p53_p7, %s671_s11, %s55_s18  }
  0x14   : > { %p762_p11 = por %p134_p10, %p68_p3  ;;  %s769_s25 = sand.u32 1, %s671_s11  }
  0x15   : > { %s440_s26 = sshll.u32 %s769_s25, 1  ;;  %s466_s27 = sshll.u32 %s679_s13, 5 }
  0x16   : > { %s966_s24 = scalar_select %p762_p11, 1, 0 }
  0x17   : > { %s778_s30 = scalar_lea.hbm %s958_s0, %s466_s27  ;;  %s158_s3 = scalar_lea.vmem [#allocation2], %s440_s26 }
  0x18   : > { %s171_s4 = sshll.u32 %s158_s3, 4  ;;  %p786_p0 = pnand %p486_p13, %p745_p4  ;;  %s782_s4 = int_to_ptr.vmem [resolvable:$true] %s171_s4 }
  0x19   : > { %s155_s6 = scalar_lea.sflag [#allocation3], %s769_s25  ;;  %s537_s7 = scalar_lea.hbm %s778_s30, 32 }
  0x1a   : > { %p538_p3 = scmp.ne.s32.totalorder %s778_s30, %s537_s7  ;;  %p539_p5 = pneg %p786_p0 }
  0x1b   : > { %s542_s16 = scalar_lea.hbm %s958_s0, 64  ;;  %p543_p4 = scmp.lt.u32.totalorder %s778_s30, %s958_s0 }
  0x1c   : > { %p540_p6 = pnand %p539_p5, %p538_p3  ;;  %p544_p10 = scmp.lt.u32.totalorder %s542_s16, %s537_s7 }
  0x1d   : > { %p546_p12 = scmp.lt.u32.totalorder %s537_s7, %s778_s30 }
  0x1e   : > { %p541_p7 = pneg %p540_p6  ;;  %p545_p13 = por %p544_p10, %p543_p4 }
  0x20   : > { %p547_p1 = por %p546_p12, %p545_p13 }
  0x22   : > { %p548_p2 = pnand %p547_p1, %p541_p7 }
  0x24   : > { %551 = shalt.err (!%p548_p2)
}
  0x25   : > { %s552_s20 = scalar_lea.vmem %s782_s4, 32  ;;  %s685_s28 = smov [#allocation2]  }
  0x26   : > { %p553_p3 = scmp.ne.s32.totalorder %s782_s4, %s552_s20  ;;  %s557_s29 = sshll.u32 %s685_s28, 4  ;;  %s558_s29 = int_to_ptr.vmem [resolvable:$false] %s557_s29 }
  0x27   : > { %s559_s3 = scalar_lea.vmem %s558_s29, 64  ;;  %p560_p9 = scmp.lt.s32.totalorder %s782_s4, %s558_s29 }
  0x28   : > { %p555_p6 = pnand %p553_p3, %p539_p5  ;;  %p561_p4 = scmp.lt.s32.totalorder %s559_s3, %s552_s20 }
  0x2a   : > { %p556_p11 = pneg %p555_p6  ;;  %p562_p10 = por %p561_p4, %p560_p9 }
  0x2c   : > { %p563_p12 = pnand %p562_p10, %p556_p11 }
  0x2e   : > { %566 = shalt.err (!%p563_p12)
}
  0x2f   : > { %478 = dma.hbm_to_vmem [thread:$0]  (!%p786_p0), %s778_s30, 32, %s782_s4, %s155_s6  }
  0x30   : > { %p968_p1 = scmp.lt.s32.totalorder %s683_s14, 3  ;;  %p969_p2 = scmp.ge.s32.totalorder %s683_s14, 1 }
  0x31   : > { %s831_s16 = scalar_lea.hbm %s959_s1, %s466_s27  ;;  %s182_s18 = scalar_lea.vmem [#allocation5], %s440_s26 }
  0x32   : > { %p822_p7 = pnand %p969_p2, %p968_p1  ;;  %s195_s19 = sshll.u32 %s182_s18, 4  ;;  %s196_s19 = int_to_ptr.vmem [resolvable:$true] %s195_s19 }
  0x33   : > { %s179_s30 = scalar_lea.sflag [#allocation6], %s769_s25  ;;  %s567_s4 = scalar_lea.hbm %s831_s16, 32 }
  0x34   : > { %s970_s7 = scalar_select %p822_p7, 1, 0 }
  0x35   : > { %p568_p9 = scmp.ne.s32.totalorder %s831_s16, %s567_s4  ;;  %s572_s27 = scalar_lea.hbm %s959_s1, 64 }
  0x36   : > { %p573_p3 = scmp.lt.u32.totalorder %s831_s16, %s959_s1  ;;  %p574_p6 = scmp.lt.u32.totalorder %s572_s27, %s567_s4 }
  0x37   : > { %p570_p11 = pnand %p568_p9, %p539_p5  ;;  %p576_p10 = scmp.lt.u32.totalorder %s567_s4, %s831_s16 }
  0x38   : > { %p575_p4 = por %p574_p6, %p573_p3 }
  0x39   : > { %p571_p13 = pneg %p570_p11 }
  0x3a   : > { %p577_p12 = por %p576_p10, %p575_p4 }
  0x3c   : > { %p578_p1 = pnand %p577_p12, %p571_p13 }
  0x3e   : > { %581 = shalt.err (!%p578_p1)
}
  0x3f   : > { %s582_s25 = scalar_lea.vmem %s196_s19, 32  ;;  %s686_s26 = smov [#allocation5]  }
  0x40   : > { %p583_p2 = scmp.ne.s32.totalorder %s196_s19, %s582_s25  ;;  %s587_s3 = sshll.u32 %s686_s26, 4  ;;  %s588_s3 = int_to_ptr.vmem [resolvable:$false] %s587_s3 }
  0x41   : > { %s589_s8 = scalar_lea.vmem %s588_s3, 64  ;;  %p590_p8 = scmp.lt.s32.totalorder %s196_s19, %s588_s3 }
  0x42   : > { %p585_p9 = pnand %p583_p2, %p539_p5  ;;  %p591_p7 = scmp.lt.s32.totalorder %s589_s8, %s582_s25 }
  0x44   : > { %p586_p11 = pneg %p585_p9  ;;  %p592_p3 = por %p591_p7, %p590_p8 }
  0x46   : > { %p593_p6 = pnand %p592_p3, %p586_p11 }
  0x48   : > { %596 = shalt.err (!%p593_p6)
}
  0x49   : > { %481 = dma.hbm_to_vmem [thread:$0]  (!%p786_p0), %s831_s16, 32, %s196_s19, %s179_s30  }
  0x4a   : > { %p971_p13 = scmp.ne.s32.totalorder %s970_s7, 0 }
  0x4b   : > { %s858_s15 = sand.u32 (!%p971_p13), 1, %s667_s10   ;;  %p972_p5 = scmp.ne.s32.totalorder (!%p971_p13), %s964_s21, 0 }
  0x4c   : > { %204 = sbr.rel (%p971_p13) target bundleno = 114 (0x72), region = 28  ;;  %s447_s18 = sshll.u32 (!%p971_p13), %s858_s15, 1 }
  0x4d   : > { %s207_s4 = scalar_lea.sflag (!%p971_p13), [#allocation3], %s858_s15  ;;  %s210_s6 = scalar_lea.vmem (!%p971_p13), [#allocation2], %s447_s18 }
  0x53   : > { %650 = dma.done.wait (%p972_p5), %s207_s4, 32  }
  0x54   : > { %652 = vsyncadd (%p972_p5), %s207_s4, 4294967264  ;;  %s216_s5 = scalar_lea.sflag [#allocation6], %s858_s15  ;;  %s219_s16 = scalar_lea.vmem [#allocation5], %s447_s18 }
  0x55   : > { %654 = dma.done.wait (%p972_p5), %s216_s5, 32  }
  0x56   : > { %656 = vsyncadd (%p972_p5), %s216_s5, 4294967264  ;;  %s449_s7 = sshll.u32 %s858_s15, 4  ;;  %v687_v0 = vmov 0.0   ;;  %v267_v1 = vlaneseq  ;;  %v257_v2 = vld [vmem:[%s210_s6] sm:$0x3]  ;;  %s468_s21 = sshll.u32 %s675_s12, 8 }
  0x57   : > { %s872_s19 = scalar_lea.vmem [#allocation7], %s449_s7  ;;  %v258_v3 = vld [vmem:[%s219_s16] sm:$0x3]  ;;  %s894_s27 = scalar_lea.hbm %s960_s2, %s468_s21 }
  0x58   : > { %255 = vst [vmem:[%s872_s19] sm:$0xff] %v687_v0  ;;  %256 = vst [vmem:[%s872_s19 + $0x8] sm:$0xff] %v687_v0  ;;  %vm259_vm0 = vcmp.gt.f32.partialorder %v258_v3, 0.0  ;;  %vm878_vm1 = vcmp.lt.s32.totalorder %v267_v1, 256  ;;  %s323_s30 = sshll.u32 %s872_s19, 4  ;;  %s307_s28 = scalar_lea.sflag [#allocation4], %s858_s15  ;;  %s896_s30 = int_to_ptr.vmem [resolvable:$true] %s323_s30 }
  0x59   : > { %v450_v4 = vsel %vm259_vm0, 1.0, %v687_v0  ;;  %s597_s29 = scalar_lea.vmem %s896_s30, 256  ;;  %p975_p0 = scmp.ne.s32.totalorder %s965_s22, 0 }
  0x5a   : > { %v262_v7 = vmul.f32 %v450_v4, %v257_v2  ;;  %v286_v8 = vmul.f32 %v450_v4, %v258_v3  ;;  %p598_p8 = scmp.ne.s32.totalorder %s896_s30, %s597_s29  ;;  %s688_s25 = smov [#allocation7]  }
  0x5b   : > { %s601_s26 = sshll.u32 %s688_s25, 4  ;;  %s602_s26 = int_to_ptr.vmem [resolvable:$false] %s601_s26 }
  0x5c   : > { %v264_v13 = vmul.f32 %v262_v7, %v257_v2  ;;  %v281_v14 = vmul.f32 %v262_v7, %v258_v3  ;;  %v295_v15 = vmul.f32 %v286_v8, %v258_v3  ;;  %p599_p7 = pnand %p598_p8, %p975_p0  ;;  %s603_s3 = scalar_lea.vmem %s602_s26, 512 }
  0x5d   : > { %p604_p10 = scmp.lt.s32.totalorder %s896_s30, %s602_s26  ;;  %p605_p12 = scmp.lt.s32.totalorder %s603_s3, %s597_s29 }
  0x5e   : > { %p600_p4 = pneg %p599_p7 }
  0x5f   : > { %v263_v5 = vld [vmem:[%s872_s19] ss:$8 sm:$0x3]  ;;  %v451_v9 = vld [vmem:[%s872_s19 + $0x1] ss:$8 sm:$0x3]  ;;  %p606_p1 = por %p605_p12, %p604_p10 }
  0x60   : > { %v453_v10 = vld [vmem:[%s872_s19 + $0x3] ss:$8 sm:$0x3]  ;;  %v455_v11 = vld [vmem:[%s872_s19 + $0x4] ss:$8 sm:$0x3]  ;;  %v276_v16 = vadd.f32 %v451_v9, %v262_v7  ;;  %v266_v20 = vadd.f32 %v264_v13, %v263_v5 }
  0x61   : > { %v457_v12 = vld [vmem:[%s872_s19 + $0x5] ss:$8 sm:$0x3]  ;;  %v459_v17 = vld [vmem:[%s872_s19 + $0x2] ss:$8 sm:$0x3]  ;;  %v290_v18 = vadd.f32 %v455_v11, %v286_v8  ;;  %v283_v21 = vadd.f32 %v453_v10, %v281_v14  ;;  %p607_p2 = pnand %p606_p1, %p600_p4 }
  0x62   : > { %v303_v19 = vadd.f32 %v459_v17, %v450_v4  ;;  %452 = vst.msk [vmem:[%s872_s19 + $0x1] ss:$8 sm:$0x3] %vm878_vm1, %v276_v16  ;;  %v297_v22 = vadd.f32 %v457_v12, %v295_v15  ;;  %271 = vst.msk [vmem:[%s872_s19] ss:$8 sm:$0x3] %vm878_vm1, %v266_v20 }
  0x63   : > { %456 = vst.msk [vmem:[%s872_s19 + $0x4] ss:$8 sm:$0x3] %vm878_vm1, %v290_v18  ;;  %454 = vst.msk [vmem:[%s872_s19 + $0x3] ss:$8 sm:$0x3] %vm878_vm1, %v283_v21 }
  0x64   : > { %460 = vst.msk [vmem:[%s872_s19 + $0x2] ss:$8 sm:$0x3] %vm878_vm1, %v303_v19  ;;  %458 = vst.msk [vmem:[%s872_s19 + $0x5] ss:$8 sm:$0x3] %vm878_vm1, %v297_v22 }
  0x65   : > { %610 = shalt.err (!%p607_p2)
}
  0x66   : > { %s611_s8 = scalar_lea.hbm %s894_s27, 256  ;;  %s615_s4 = scalar_lea.hbm %s960_s2, 512 }
  0x67   : > { %p612_p9 = scmp.ne.s32.totalorder %s894_s27, %s611_s8  ;;  %p616_p6 = scmp.lt.u32.totalorder %s894_s27, %s960_s2 }
  0x68   : > { %p617_p13 = scmp.lt.u32.totalorder %s615_s4, %s611_s8  ;;  %p619_p8 = scmp.lt.u32.totalorder %s611_s8, %s894_s27 }
  0x69   : > { %p613_p11 = pnand %p612_p9, %p975_p0 }
  0x6a   : > { %p618_p5 = por %p617_p13, %p616_p6 }
  0x6b   : > { %p614_p3 = pneg %p613_p11 }
  0x6c   : > { %p620_p7 = por %p619_p8, %p618_p5 }
  0x6e   : > { %p621_p4 = pnand %p620_p7, %p614_p3 }
  0x70   : > { %624 = shalt.err (!%p621_p4)
}
  0x71   : > { %473 = dma.vmem_to_hbm [thread:$0]  (%p975_p0), %s896_s30, 256, %s894_s27, %s307_s28  }
  0x72 PF: > { %s335_s16 = sand.u32 1, %s663_s9   ;;  %p976_p10 = scmp.ne.s32.totalorder %s966_s24, 0 }
  0x73   : > { %p977_p12 = scmp.ge.s32.totalorder %s683_s14, 2  ;;  %s336_s7 = scalar_lea.sflag [#allocation4], %s335_s16 }
  0x75   : > { %p483_p1 = pnand %p977_p12, %p976_p10 }
  0x77   : > { %658 = dma.done.wait (!%p483_p1), %s336_s7, 256  }
  0x78   : > { %660 = vsyncadd (!%p483_p1), %s336_s7, 4294967040  ;;  %s21_s14 = sadd.s32 1, %s683_s14   ;;  %s978_s9 = smov %s667_s10 }
  0x79   : > { %p18_p2 = scmp.ge.s32.totalorder %s21_s14, 4   ;;  %s979_s10 = smov %s671_s11 }
  0x7a   : > { %s980_s11 = smov %s760_s23  ;;  %s981_s12 = smov %s679_s13 }
  0x7b   : > { %s982_s13 = smov %s984_s17  ;;  %20 = sbr.rel (!%p18_p2) target bundleno = 8 (0x8), region = 95 }
  0x82   :  { %341 = vsyncpa [#allocation3], 1 }
  0x83   :  { %343 = vsyncpa [#allocation3 + $0x1], 1 }
  0x84   :  { %344 = vsyncpa [#allocation6], 1 }
  0x85   :  { %346 = vsyncpa [#allocation6 + $0x1], 1 }
  0x86   :  { %347 = vsyncpa [#allocation4], 1 }
  0x87   :  { %349 = vsyncpa [#allocation4 + $0x1], 1 }

</bundles_post_ra>
